<compile_context>
chip_gen: v5e
topology: v5e:2x2
jax: 0.10.0
libtpu: 0.0.40
codegen_flags: <defaults>
</compile_context>

<pallas_src>
import jax
import jax.numpy as jnp
from jax.experimental import pallas as pl
from jax.experimental.pallas import tpu as pltpu


_LANE = 128
_MAX_INLINE_K = 4096     # input_dims (padded) up to this -> single-shot kernel
_TK = 2048               # K-tile size for the (rare) tiled fallback path
_NEG_INF = -1.0e30       # bias for padded action lanes -> softmax mass 0


def _round_up(x, m):
    return ((x + m - 1) // m) * m


# ---------------------------------------------------------------------------
# Shared "head": PReLU -> Linear -> PReLU -> Linear -> masked softmax.
# `h1_pre` is the (B, fc1) pre-bias output of the first Linear, in f32.
# ---------------------------------------------------------------------------
def _mlp_head(h1_pre, slopes_ref, b1_ref, w2_ref, b2_ref, w3_ref, b3_ref):
    # TODO(synk): nn.Dropout(0.1) layers are identity in eval mode; the
    # stochastic training-mode mask is not implemented.
    a1 = slopes_ref[0]                                   # shared PReLU slopes
    a2 = slopes_ref[1]                                   # (scalar SMEM reads)

    h = h1_pre + b1_ref[...]
    h = jnp.where(h > 0, h, a1 * h)                      # PReLU 1
    h = jnp.dot(h.astype(jnp.bfloat16), w2_ref[...],
                preferred_element_type=jnp.float32) + b2_ref[...]
    h = jnp.where(h > 0, h, a2 * h)                      # PReLU 2
    logits = jnp.dot(h.astype(jnp.bfloat16), w3_ref[...],
                     preferred_element_type=jnp.float32) + b3_ref[...]

    # Numerically-stable softmax.  Padded action lanes have bias -1e30 (and
    # zero weight columns), so exp underflows to exactly 0 for them.
    m = jnp.max(logits, axis=-1, keepdims=True)
    e = jnp.exp(logits - m)
    inv = pl.reciprocal(jnp.sum(e, axis=-1, keepdims=True), approx=False)
    return e * inv


# ---------------------------------------------------------------------------
# Single-shot fused kernel (no grid): all three Linears + PReLU + softmax.
# ---------------------------------------------------------------------------
def _actor_fused_kernel(slopes_ref, x_ref, w1_ref, b1_ref, w2_ref, b2_ref,
                        w3_ref, b3_ref, o_ref):
    h1_pre = jnp.dot(x_ref[...].astype(jnp.bfloat16), w1_ref[...],
                     preferred_element_type=jnp.float32)
    o_ref[...] = _mlp_head(h1_pre, slopes_ref, b1_ref, w2_ref, b2_ref,
                           w3_ref, b3_ref)


# ---------------------------------------------------------------------------
# K-tiled fallback kernel (only used when padded input_dims > _MAX_INLINE_K).
# Grid axis 0 tiles the K dimension of the first matmul (reduction axis).
# ---------------------------------------------------------------------------
def _actor_tiled_kernel(slopes_ref, x_ref, w1_ref, b1_ref, w2_ref, b2_ref,
                        w3_ref, b3_ref, o_ref, acc_ref):
    k = pl.program_id(0)

    @pl.when(k == 0)
    def _():
        acc_ref[...] = jnp.zeros_like(acc_ref)

    acc_ref[...] += jnp.dot(x_ref[...].astype(jnp.bfloat16), w1_ref[...],
                            preferred_element_type=jnp.float32)

    @pl.when(k == pl.num_programs(0) - 1)
    def _():
        o_ref[...] = _mlp_head(acc_ref[...], slopes_ref, b1_ref, w2_ref,
                               b2_ref, w3_ref, b3_ref)


def actor_forward(state, p, *, n_actions):
    """state: (B, input_dims) f32.  p: dict of TPU-prepared params."""
    b, d = state.shape
    dp, h1p = p["w1"].shape
    h2p = p["w2"].shape[1]
    n_pad = p["w3"].shape[1]
    assert d <= dp

    x = state.astype(jnp.float32)
    if d != dp:                              # lane-pad the feature dim only;
        x = jnp.pad(x, ((0, 0), (0, dp - d)))  # batch stays at its true size.

    cost = pl.CostEstimate(
        flops=2 * b * (dp * h1p + h1p * h2p + h2p * n_pad),
        transcendentals=b * n_pad,
        bytes_accessed=(4 * (b * dp + b * n_pad)                       # x, out
                        + 2 * (dp * h1p + h1p * h2p + h2p * n_pad)     # bf16 w
                        + 4 * (h1p + h2p + n_pad + 2)),                # b, a
    )

    operands = (p["slopes"], x, p["w1"], p["b1"], p["w2"], p["b2"],
                p["w3"], p["b3"])

    if dp <= _MAX_INLINE_K:
        # --- single-shot path: everything resident in VMEM, no grid. -------
        vmem = pl.BlockSpec(memory_space=pltpu.MemorySpace.VMEM)
        smem = pl.BlockSpec(memory_space=pltpu.MemorySpace.SMEM)
        out = pl.pallas_call(
            _actor_fused_kernel,
            out_shape=jax.ShapeDtypeStruct((b, n_pad), jnp.float32),
            in_specs=[smem, vmem, vmem, vmem, vmem, vmem, vmem, vmem],
            out_specs=vmem,
            cost_estimate=cost,
        )(*operands)
    else:
        # --- K-tiled fallback for very wide inputs (dp % _TK == 0). --------
        # NOTE(v7x): re-derive _TK against the 64 MiB VMEM budget if layer
        # widths are ever scaled up.
        nk = dp // _TK
        inv = dict(pipeline_mode=pl.Buffered(1))     # grid-invariant operands
        out = pl.pallas_call(
            _actor_tiled_kernel,
            out_shape=jax.ShapeDtypeStruct((b, n_pad), jnp.float32),
            grid_spec=pltpu.PrefetchScalarGridSpec(
                num_scalar_prefetch=0,
                grid=(nk,),
                in_specs=[
                    pl.BlockSpec(memory_space=pltpu.MemorySpace.SMEM),   # a1,a2
                    pl.BlockSpec((b, _TK), lambda k: (0, k)),            # x
                    pl.BlockSpec((_TK, h1p), lambda k: (k, 0)),          # w1
                    pl.BlockSpec((1, h1p), lambda k: (0, 0), **inv),     # b1
                    pl.BlockSpec((h1p, h2p), lambda k: (0, 0), **inv),   # w2
                    pl.BlockSpec((1, h2p), lambda k: (0, 0), **inv),     # b2
                    pl.BlockSpec((h2p, n_pad), lambda k: (0, 0), **inv), # w3
                    pl.BlockSpec((1, n_pad), lambda k: (0, 0), **inv),   # b3
                ],
                out_specs=pl.BlockSpec((b, n_pad), lambda k: (0, 0)),
                scratch_shapes=[pltpu.VMEM((b, h1p), jnp.float32)],
            ),
            compiler_params=pltpu.CompilerParams(
                dimension_semantics=("arbitrary",)),
            cost_estimate=cost,
        )(*operands)

    return out[:, :n_actions]


# ---------------------------------------------------------------------------
# Parameter construction (synthetic, PyTorch-default init) and one-time
# TPU layout preparation (lane padding + bf16 cast done ONCE, not per call).
# ---------------------------------------------------------------------------
def init_params(key, input_dims, n_actions, fc1_dims, fc2_dims):
    ks = jax.random.split(key, 6)

    def uniform(k, shape, fan_in):
        bound = 1.0 / (float(fan_in) ** 0.5)
        return jax.random.uniform(k, shape, jnp.float32, -bound, bound)

    return {
        # Linear weights stored (in, out); PyTorch stores (out, in) and applies
        # x @ W.T -- equivalent for these synthetic weights (a real checkpoint
        # would need a transpose at load time).
        "w1": uniform(ks[0], (input_dims, fc1_dims), input_dims),
        "b1": uniform(ks[1], (fc1_dims,), input_dims),
        "w2": uniform(ks[2], (fc1_dims, fc2_dims), fc1_dims),
        "b2": uniform(ks[3], (fc2_dims,), fc1_dims),
        "w3": uniform(ks[4], (fc2_dims, n_actions), fc2_dims),
        "b3": uniform(ks[5], (n_actions,), fc2_dims),
        # nn.PReLU() default: single shared slope initialized to 0.25.
        "a1": jnp.full((1,), 0.25, jnp.float32),
        "a2": jnp.full((1,), 0.25, jnp.float32),
    }


def pad_params_for_tpu(params, *, lane=_LANE):
    """Lane-pad once: hidden dims and n_actions -> multiples of 128; weights
    cast to bf16; padded action lanes get a -1e30 bias (zero softmax mass)."""
    d, h1 = params["w1"].shape
    h2 = params["w2"].shape[1]
    n_act = params["w3"].shape[1]

    dp = _round_up(d, lane)
    if dp > _MAX_INLINE_K:                 # tiled path needs K % _TK == 0
        dp = _round_up(dp, _TK)
    h1p = _round_up(h1, lane)
    h2p = _round_up(h2, lane)
    n_pad = _round_up(n_act, lane)

    def zpad(w, shape):
        return jnp.zeros(shape, jnp.float32).at[:w.shape[0], :w.shape[1]].set(w)

    b3 = jnp.full((1, n_pad), _NEG_INF, jnp.float32)
    b3 = b3.at[:, :n_act].set(params["b3"][None, :])

    return {
        "w1": zpad(params["w1"], (dp, h1p)).astype(jnp.bfloat16),
        "b1": zpad(params["b1"][None, :], (1, h1p)),
        "w2": zpad(params["w2"], (h1p, h2p)).astype(jnp.bfloat16),
        "b2": zpad(params["b2"][None, :], (1, h2p)),
        "w3": zpad(params["w3"], (h2p, n_pad)).astype(jnp.bfloat16),
        "b3": b3,
        # Both PReLU slopes packed into one tiny SMEM-resident array.
        "slopes": jnp.concatenate([params["a1"], params["a2"]]).astype(
            jnp.float32),
    }


def _reference_forward(x, p):
    """Pure-JAX reference matching the kernel's bf16-weight/activation
    numerics (f32 accumulation)."""
    bf = lambda v: v.astype(jnp.bfloat16).astype(jnp.float32)
    h = bf(x) @ bf(p["w1"]) + p["b1"]
    h = jnp.where(h > 0, h, p["a1"] * h)
    h = bf(h) @ bf(p["w2"]) + p["b2"]
    h = jnp.where(h > 0, h, p["a2"] * h)
    logits = bf(h) @ bf(p["w3"]) + p["b3"]
    return jax.nn.softmax(logits, axis=-1)


if __name__ == "__main__":
    # Turtlebot3 SAC Actor-style sizes (kept small): laser-scan state vector.
    input_dims, n_actions, fc1_dims, fc2_dims = 364, 5, 256, 256
    batch = 2   # NOTE: throughput scales ~free up to B~128-256 (fixed-overhead
                # bound kernel); batch callers should stack states.

    key = jax.random.PRNGKey(0)
    pkey, xkey = jax.random.split(key)
    raw_params = init_params(pkey, input_dims, n_actions, fc1_dims, fc2_dims)
    tpu_params = pad_params_for_tpu(raw_params)
    state = jax.random.normal(xkey, (batch, input_dims), dtype=jnp.float32)

    fwd = jax.jit(actor_forward, static_argnames="n_actions")
    probs = jax.block_until_ready(fwd(state, tpu_params, n_actions=n_actions))

    expected = _reference_forward(state, raw_params)
    assert probs.shape == (batch, n_actions) and probs.dtype == jnp.float32
    assert jnp.allclose(probs, expected, rtol=2e-3, atol=2e-3)
    assert jnp.allclose(jnp.sum(probs, axis=-1), 1.0, atol=1e-5)
    print("KERNEL_OK")
</pallas_src>

<mosaic_0001>
module attributes {stable_mosaic.version = 11 : i64} {
  func.func @_actor_fused_kernel(%arg0: memref<2xf32, #tpu.memory_space<smem>>, %arg1: memref<2x384xf32, #tpu.memory_space<vmem>>, %arg2: memref<384x256xbf16, #tpu.memory_space<vmem>>, %arg3: memref<1x256xf32, #tpu.memory_space<vmem>>, %arg4: memref<256x256xbf16, #tpu.memory_space<vmem>>, %arg5: memref<1x256xf32, #tpu.memory_space<vmem>>, %arg6: memref<256x128xbf16, #tpu.memory_space<vmem>>, %arg7: memref<1x128xf32, #tpu.memory_space<vmem>>, %arg8: memref<2x128xf32, #tpu.memory_space<vmem>>) attributes {dimension_semantics = [], scalar_prefetch = 0 : i64, scratch_operands = 0 : i64, tpu.core_type = #tpu.core_type<tc>} {
    %c0 = arith.constant 0 : index
    %c0_0 = arith.constant 0 : index
    %0 = vector.load %arg1[%c0, %c0_0] : memref<2x384xf32, #tpu.memory_space<vmem>>, vector<2x384xf32>
    %1 = arith.truncf %0 : vector<2x384xf32> to vector<2x384xbf16>
    %c0_1 = arith.constant 0 : index
    %c0_2 = arith.constant 0 : index
    %2 = vector.load %arg2[%c0_1, %c0_2] : memref<384x256xbf16, #tpu.memory_space<vmem>>, vector<384x256xbf16>
    %cst = arith.constant dense<0.000000e+00> : vector<2x256xf32>
    %3 = tpu.matmul %1, %2, %cst {dimension_numbers = #tpu.dot_dimension_numbers<[1], [0], [0], [1], [0, 0, 1, 1], [], []>} : vector<2x384xbf16>, vector<384x256xbf16>, vector<2x256xf32> -> vector<2x256xf32>
    %c0_3 = arith.constant 0 : index
    %4 = memref.load %arg0[%c0_3] : memref<2xf32, #tpu.memory_space<smem>>
    %c1 = arith.constant 1 : index
    %5 = memref.load %arg0[%c1] : memref<2xf32, #tpu.memory_space<smem>>
    %c0_4 = arith.constant 0 : index
    %c0_5 = arith.constant 0 : index
    %6 = vector.load %arg3[%c0_4, %c0_5] : memref<1x256xf32, #tpu.memory_space<vmem>>, vector<1x256xf32>
    %7 = vector.broadcast %6 : vector<1x256xf32> to vector<2x256xf32>
    %8 = arith.addf %3, %7 : vector<2x256xf32>
    %cst_6 = arith.constant 0.000000e+00 : f32
    %9 = vector.broadcast %cst_6 : f32 to vector<2x256xf32>
    %10 = arith.cmpf ogt, %8, %9 : vector<2x256xf32>
    %11 = vector.broadcast %4 : f32 to vector<2x256xf32>
    %12 = arith.mulf %11, %8 : vector<2x256xf32>
    %13 = arith.select %10, %8, %12 : vector<2x256xi1>, vector<2x256xf32>
    %14 = arith.truncf %13 : vector<2x256xf32> to vector<2x256xbf16>
    %c0_7 = arith.constant 0 : index
    %c0_8 = arith.constant 0 : index
    %15 = vector.load %arg4[%c0_7, %c0_8] : memref<256x256xbf16, #tpu.memory_space<vmem>>, vector<256x256xbf16>
    %cst_9 = arith.constant dense<0.000000e+00> : vector<2x256xf32>
    %16 = tpu.matmul %14, %15, %cst_9 {dimension_numbers = #tpu.dot_dimension_numbers<[1], [0], [0], [1], [0, 0, 1, 1], [], []>} : vector<2x256xbf16>, vector<256x256xbf16>, vector<2x256xf32> -> vector<2x256xf32>
    %c0_10 = arith.constant 0 : index
    %c0_11 = arith.constant 0 : index
    %17 = vector.load %arg5[%c0_10, %c0_11] : memref<1x256xf32, #tpu.memory_space<vmem>>, vector<1x256xf32>
    %18 = vector.broadcast %17 : vector<1x256xf32> to vector<2x256xf32>
    %19 = arith.addf %16, %18 : vector<2x256xf32>
    %cst_12 = arith.constant 0.000000e+00 : f32
    %20 = vector.broadcast %cst_12 : f32 to vector<2x256xf32>
    %21 = arith.cmpf ogt, %19, %20 : vector<2x256xf32>
    %22 = vector.broadcast %5 : f32 to vector<2x256xf32>
    %23 = arith.mulf %22, %19 : vector<2x256xf32>
    %24 = arith.select %21, %19, %23 : vector<2x256xi1>, vector<2x256xf32>
    %25 = arith.truncf %24 : vector<2x256xf32> to vector<2x256xbf16>
    %c0_13 = arith.constant 0 : index
    %c0_14 = arith.constant 0 : index
    %26 = vector.load %arg6[%c0_13, %c0_14] : memref<256x128xbf16, #tpu.memory_space<vmem>>, vector<256x128xbf16>
    %cst_15 = arith.constant dense<0.000000e+00> : vector<2x128xf32>
    %27 = tpu.matmul %25, %26, %cst_15 {dimension_numbers = #tpu.dot_dimension_numbers<[1], [0], [0], [1], [0, 0, 1, 1], [], []>} : vector<2x256xbf16>, vector<256x128xbf16>, vector<2x128xf32> -> vector<2x128xf32>
    %c0_16 = arith.constant 0 : index
    %c0_17 = arith.constant 0 : index
    %28 = vector.load %arg7[%c0_16, %c0_17] : memref<1x128xf32, #tpu.memory_space<vmem>>, vector<1x128xf32>
    %29 = vector.broadcast %28 : vector<1x128xf32> to vector<2x128xf32>
    %30 = arith.addf %27, %29 : vector<2x128xf32>
    %cst_18 = arith.constant dense<0xFF800000> : vector<2xf32>
    %31 = vector.multi_reduction <maximumf>, %30, %cst_18 [1] : vector<2x128xf32> to vector<2xf32>
    %32 = vector.shape_cast %31 : vector<2xf32> to vector<2x1xf32>
    %33 = vector.broadcast %32 : vector<2x1xf32> to vector<2x128xf32>
    %34 = arith.subf %30, %33 : vector<2x128xf32>
    %35 = math.exp %34 : vector<2x128xf32>
    %cst_19 = arith.constant dense<0.000000e+00> : vector<2xf32>
    %36 = vector.multi_reduction <add>, %35, %cst_19 [1] : vector<2x128xf32> to vector<2xf32>
    %37 = vector.shape_cast %36 : vector<2xf32> to vector<2x1xf32>
    %38 = tpu.reciprocal %37 : vector<2x1xf32> -> vector<2x1xf32>
    %39 = vector.broadcast %38 : vector<2x1xf32> to vector<2x128xf32>
    %40 = arith.mulf %35, %39 : vector<2x128xf32>
    %c0_20 = arith.constant 0 : index
    %c0_21 = arith.constant 0 : index
    %41 = vector.load %arg8[%c0_20, %c0_21] : memref<2x128xf32, #tpu.memory_space<vmem>>, vector<2x128xf32>
    tpu.vector_store %arg8[%c0_20, %c0_21], %40 {strides = array<i32>} : memref<2x128xf32, #tpu.memory_space<vmem>>, vector<2x128xf32>,
    return
  }
}

</mosaic_0001>

<bundles_post_ra>
// kernel: actor_forward.1
= control target key start
LH: loop header
LB: loop body
LE: loop exit
PB: predicated region body
PF: predicated region fallthrough
CT: control target
= control target key end

     0   :  { %13 = vsyncpa [#allocation5], 0  ;;  %s1650_s0 = inlined_call_operand.vmem [shape: f32[2], index: 0, kind: input, shape index: {}]   ;;  %s1651_s1 = inlined_call_operand.vmem [shape: f32[2,384], index: 1, kind: input, shape index: {}]   ;;  %s1652_s2 = inlined_call_operand.hbm [shape: bf16[384,256], index: 2, kind: input, shape index: {}]   ;;  %s1653_s3 = inlined_call_operand.vmem [shape: f32[1,256], index: 3, kind: input, shape index: {}]   ;;  %s1654_s4 = inlined_call_operand.hbm [shape: bf16[256,256], index: 4, kind: input, shape index: {}]   ;;  %s1655_s5 = inlined_call_operand.vmem [shape: f32[1,256], index: 5, kind: input, shape index: {}]   ;;  %s1656_s6 = inlined_call_operand.hbm [shape: bf16[256,128], index: 6, kind: input, shape index: {}]   ;;  %s1657_s7 = inlined_call_operand.vmem [shape: f32[1,128], index: 7, kind: input, shape index: {}]   ;;  %s1658_s8 = inlined_call_operand.hbm [shape: f32[2,128], index: 8, kind: output, shape index: {}]  }
   0x1   :  { %14 = vsyncpa [#allocation3], 0 }
   0x2   :  { %15 = vsyncpa [#allocation8], 0 }
   0x3   :  { %16 = vsyncpa [#allocation4], 0  ;;  %s47_s29 = sshll.u32 %s1654_s4, 4  ;;  %s1558_s30 = smov [#allocation7]   ;;  %s48_s29 = int_to_ptr.hbm [resolvable:$true] %s47_s29 }
   0x4   :  { %s49_s9 = sshll.u32 %s1558_s30, 4  ;;  %s22_s12 = sshll.u32 %s1650_s0, 4  ;;  %s50_s9 = int_to_ptr.vmem [resolvable:$true] %s49_s9  ;;  %s23_s12 = int_to_ptr.vmem [resolvable:$true] %s22_s12 }
   0x5   :  { %s1559_s13 = smov 128   ;;  %s1560_s14 = smov 8  }
   0x6   :  { %55 = dma.hbm_to_vmem [thread:$0]  %s48_s29, 4096, %s50_s9, [#allocation8], %s1559_s13, %s1559_s13, %s1560_s14  }
   0x7   :  { %s1561_s15 = smov [#allocation2]   ;;  %s32_s18 = sshll.u32 %s1652_s2, 4  ;;  %s33_s18 = int_to_ptr.hbm [resolvable:$true] %s32_s18 }
   0x8   :  { %25 = dma.vmem_to_smem %s23_s12, 16, %s1561_s15, [#allocation5]  }
   0x9   :  { %s1562_s4 = smov [#allocation6]   ;;  %s62_s22 = sshll.u32 %s1656_s6, 4  ;;  %s63_s22 = int_to_ptr.hbm [resolvable:$true] %s62_s22 }
   0xa   :  { %s34_s19 = sshll.u32 %s1562_s4, 4  ;;  %s1563_s0 = smov [#allocation9]   ;;  %s35_s19 = int_to_ptr.vmem [resolvable:$true] %s34_s19 }
   0xb   :  { %40 = dma.hbm_to_vmem [thread:$0]  %s33_s18, 6144, %s35_s19, [#allocation3], %s1559_s13, %s1559_s13, %s1560_s14  }
   0xc   :  { %s64_s23 = sshll.u32 %s1563_s0, 4  ;;  %s1564_s24 = smov 64   ;;  %s65_s23 = int_to_ptr.vmem [resolvable:$true] %s64_s23 }
   0xd   :  { %s1565_s25 = smov 4  }
   0xe   :  { %70 = dma.hbm_to_vmem [thread:$0]  %s63_s22, 2048, %s65_s23, [#allocation8], %s1564_s24, %s1564_s24, %s1565_s25  }
   0xf   :  { %1550 = dma.done.wait [#allocation5], 16  }
  0x10   :  { %1551 = vsyncadd [#allocation5], 4294967280 }
  0x11   :  { %1552 = dma.done.wait [#allocation3], 6144  }
  0x12   :  { %1553 = vsyncadd [#allocation3], 4294961152 }
  0x13   :  { %1554 = dma.done.wait [#allocation8], 6144  }
  0x14   :  { %1555 = vsyncadd [#allocation8], 4294961152 }
  0x15   :  { %89 = sfence }
  0x16   :  { %v1006_v0 = vld [vmem:[#allocation6 + $0x70] sm:$0xf]  ;;  %v1347_v1 = vld [vmem:[#allocation6 + $0x74] sm:$0xf0]  ;;  %v998_v9 = vld [vmem:[#allocation6 + $0x60] sm:$0xf] }
  0x17   :  { %v1070_v2 = vld [vmem:[#allocation6 + $0xf0] sm:$0xf]  ;;  %v1007_v3 = vor.u32 %v1347_v1, %v1006_v0  ;;  %v1363_v4 = vld [vmem:[#allocation6 + $0xf4] sm:$0xf0]  ;;  %v1345_v10 = vld [vmem:[#allocation6 + $0x64] sm:$0xf0] }
  0x18   :  { %v1134_v5 = vld [vmem:[#allocation6 + $0x170] sm:$0xf]  ;;  %v1379_v6 = vld [vmem:[#allocation6 + $0x174] sm:$0xf0]  ;;  %v1071_v7 = vor.u32 %v1363_v4, %v1070_v2  ;;  %v1062_v11 = vld [vmem:[#allocation6 + $0xe0] sm:$0xf]  ;;  %v999_v12 = vor.u32 %v1345_v10, %v998_v9 }
  0x19   :  { %v1135_v8 = vor.u32 %v1379_v6, %v1134_v5  ;;  %398 = vmatpush.bf16.msra.mxu0 %v1007_v3  ;;  %v1361_v13 = vld [vmem:[#allocation6 + $0xe4] sm:$0xf0]  ;;  %v1126_v14 = vld [vmem:[#allocation6 + $0x160] sm:$0xf]  ;;  %v990_v18 = vld [vmem:[#allocation6 + $0x50] sm:$0xf] }
  0x1a   :  { %v1377_v15 = vld [vmem:[#allocation6 + $0x164] sm:$0xf0]  ;;  %411 = vmatpush.bf16.msra.mxu1 %v1071_v7  ;;  %v1063_v16 = vor.u32 %v1361_v13, %v1062_v11  ;;  %v1343_v19 = vld [vmem:[#allocation6 + $0x54] sm:$0xf0]  ;;  %v1054_v20 = vld [vmem:[#allocation6 + $0xd0] sm:$0xf] }
  0x1b   :  { %424 = vmatpush.bf16.msra.mxu2 %v1135_v8  ;;  %v1127_v17 = vor.u32 %v1377_v15, %v1126_v14  ;;  %v1359_v21 = vld [vmem:[#allocation6 + $0xd4] sm:$0xf0]  ;;  %v1118_v22 = vld [vmem:[#allocation6 + $0x150] sm:$0xf]  ;;  %v991_v24 = vor.u32 %v1343_v19, %v990_v18  ;;  %v982_v25 = vld [vmem:[#allocation6 + $0x40] sm:$0xf] }
  0x1c   :  { %v1375_v23 = vld [vmem:[#allocation6 + $0x154] sm:$0xf0]  ;;  %v1341_v26 = vld [vmem:[#allocation6 + $0x44] sm:$0xf0]  ;;  %v1055_v27 = vor.u32 %v1359_v21, %v1054_v20  ;;  %v1046_v29 = vld [vmem:[#allocation6 + $0xc0] sm:$0xf] }
  0x1d   :  { %399 = vmatpush.bf16.msra.mxu0 %v999_v12  ;;  %v1119_v28 = vor.u32 %v1375_v23, %v1118_v22  ;;  %v1346_v30 = vld [vmem:[#allocation6 + $0x74] sm:$0xf]  ;;  %v1008_v31 = vld [vmem:[#allocation6 + $0x78] sm:$0xf0]  ;;  %v1357_v32 = vld [vmem:[#allocation6 + $0xc4] sm:$0xf0]  ;;  %v983_v37 = vor.u32 %v1341_v26, %v982_v25 }
  0x1e   :  { %412 = vmatpush.bf16.msra.mxu1 %v1063_v16  ;;  %v1110_v33 = vld [vmem:[#allocation6 + $0x140] sm:$0xf]  ;;  %v1373_v34 = vld [vmem:[#allocation6 + $0x144] sm:$0xf0]  ;;  %v1011_v35 = vor.u32 %v1346_v30, %v1008_v31  ;;  %v1344_v36 = vld [vmem:[#allocation6 + $0x64] sm:$0xf]  ;;  %v1047_v41 = vor.u32 %v1357_v32, %v1046_v29 }
  0x1f   :  { %425 = vmatpush.bf16.msra.mxu2 %v1127_v17  ;;  %v974_v38 = vld [vmem:[#allocation6 + $0x30] sm:$0xf]  ;;  %v1339_v39 = vld [vmem:[#allocation6 + $0x34] sm:$0xf0]  ;;  %v1000_v40 = vld [vmem:[#allocation6 + $0x68] sm:$0xf0]  ;;  %v1111_v42 = vor.u32 %v1373_v34, %v1110_v33 }
  0x20   :  { %437 = vmatpush.bf16.msra.mxu3 %v1011_v35  ;;  %v1038_v43 = vld [vmem:[#allocation6 + $0xb0] sm:$0xf]  ;;  %v1355_v44 = vld [vmem:[#allocation6 + $0xb4] sm:$0xf0]  ;;  %v1003_v46 = vor.u32 %v1344_v36, %v1000_v40  ;;  %v1342_v48 = vld [vmem:[#allocation6 + $0x54] sm:$0xf]  ;;  %v975_v50 = vor.u32 %v1339_v39, %v974_v38 }
  0x21   :  { %400 = vmatpush.bf16.msra.mxu0 %v991_v24  ;;  %v1102_v45 = vld [vmem:[#allocation6 + $0x130] sm:$0xf]  ;;  %v1371_v47 = vld [vmem:[#allocation6 + $0x134] sm:$0xf0]  ;;  %v992_v49 = vld [vmem:[#allocation6 + $0x58] sm:$0xf0]  ;;  %v1039_v54 = vor.u32 %v1355_v44, %v1038_v43 }
  0x22   :  { %413 = vmatpush.bf16.msra.mxu1 %v1055_v27  ;;  %v966_v51 = vld [vmem:[#allocation6 + $0x20] sm:$0xf]  ;;  %v1337_v52 = vld [vmem:[#allocation6 + $0x24] sm:$0xf0]  ;;  %v995_v53 = vor.u32 %v1342_v48, %v992_v49  ;;  %v1103_v55 = vor.u32 %v1371_v47, %v1102_v45  ;;  %v1340_v57 = vld [vmem:[#allocation6 + $0x44] sm:$0xf] }
  0x23   :  { %426 = vmatpush.bf16.msra.mxu2 %v1119_v28  ;;  %v1030_v56 = vld [vmem:[#allocation6 + $0xa0] sm:$0xf]  ;;  %v984_v58 = vld [vmem:[#allocation6 + $0x48] sm:$0xf0]  ;;  %v1353_v59 = vld [vmem:[#allocation6 + $0xa4] sm:$0xf0]  ;;  %v967_v63 = vor.u32 %v1337_v52, %v966_v51 }
  0x24   :  { %438 = vmatpush.bf16.msra.mxu3 %v1003_v46  ;;  %v1094_v60 = vld [vmem:[#allocation6 + $0x120] sm:$0xf]  ;;  %v1369_v61 = vld [vmem:[#allocation6 + $0x124] sm:$0xf0]  ;;  %v958_v62 = vld [vmem:[#allocation6 + $0x10] sm:$0xf]  ;;  %v987_v3 = vor.u32 %v1340_v57, %v984_v58  ;;  %v1031_v4 = vor.u32 %v1353_v59, %v1030_v56 }
  0x25   :  { %401 = vmatpush.bf16.msra.mxu0 %v983_v37  ;;  %v1335_v0 = vld [vmem:[#allocation6 + $0x14] sm:$0xf0]  ;;  %v1022_v1 = vld [vmem:[#allocation6 + $0x90] sm:$0xf]  ;;  %v1095_v5 = vor.u32 %v1369_v61, %v1094_v60  ;;  %v1338_v6 = vld [vmem:[#allocation6 + $0x34] sm:$0xf] }
  0x26   :  { %414 = vmatpush.bf16.msra.mxu1 %v1047_v41  ;;  %v1351_v2 = vld [vmem:[#allocation6 + $0x94] sm:$0xf0]  ;;  %v976_v7 = vld [vmem:[#allocation6 + $0x38] sm:$0xf0]  ;;  %v1086_v9 = vld [vmem:[#allocation6 + $0x110] sm:$0xf]  ;;  %v959_v11 = vor.u32 %v1335_v0, %v958_v62 }
  0x27   :  { %427 = vmatpush.bf16.msra.mxu2 %v1111_v42  ;;  %v90_v8 = vld [vmem:[%s1651_s1] sm:$0x3f]  ;;  %v950_v12 = vld [vmem:[#allocation6] sm:$0xf]  ;;  %v1333_v13 = vld [vmem:[#allocation6 + $0x4] sm:$0xf0]  ;;  %v979_v15 = vor.u32 %v1338_v6, %v976_v7  ;;  %v1023_v16 = vor.u32 %v1351_v2, %v1022_v1 }
  0x28   :  { %439 = vmatpush.bf16.msra.mxu3 %v995_v53  ;;  %v1367_v10 = vld [vmem:[#allocation6 + $0x114] sm:$0xf0]  ;;  %92 = vst [vmem:[#allocation1] ss:$4 sm:$0xff] %v90_v8  ;;  %v1014_v14 = vld [vmem:[#allocation6 + $0x80] sm:$0xf]  ;;  %v951_v27 = vor.u32 %v1333_v13, %v950_v12 }
  0x29   :  { %402 = vmatpush.bf16.msra.mxu0 %v975_v50  ;;  %v1087_v17 = vor.u32 %v1367_v10, %v1086_v9  ;;  %v1349_v18 = vld [vmem:[#allocation6 + $0x84] sm:$0xf0]  ;;  %v1336_v19 = vld [vmem:[#allocation6 + $0x24] sm:$0xf]  ;;  %v968_v20 = vld [vmem:[#allocation6 + $0x28] sm:$0xf0] }
  0x2a   :  { %415 = vmatpush.bf16.msra.mxu1 %v1039_v54  ;;  %v1078_v21 = vld [vmem:[#allocation6 + $0x100] sm:$0xf]  ;;  %v1365_v22 = vld [vmem:[#allocation6 + $0x104] sm:$0xf0]  ;;  %v1362_v23 = vld [vmem:[#allocation6 + $0xf4] sm:$0xf]  ;;  %v971_v28 = vor.u32 %v1336_v19, %v968_v20  ;;  %v1015_v30 = vor.u32 %v1349_v18, %v1014_v14 }
  0x2b   :  { %428 = vmatpush.bf16.msra.mxu2 %v1103_v55  ;;  %v1072_v24 = vld [vmem:[#allocation6 + $0xf8] sm:$0xf0]  ;;  %v1378_v25 = vld [vmem:[#allocation6 + $0x174] sm:$0xf]  ;;  %v1079_v31 = vor.u32 %v1365_v22, %v1078_v21  ;;  %v1360_v33 = vld [vmem:[#allocation6 + $0xe4] sm:$0xf] }
  0x2c   :  { %440 = vmatpush.bf16.msra.mxu3 %v987_v3  ;;  %v1136_v26 = vld [vmem:[#allocation6 + $0x178] sm:$0xf0]  ;;  %v1334_v29 = vld [vmem:[#allocation6 + $0x14] sm:$0xf]  ;;  %v1075_v35 = vor.u32 %v1362_v23, %v1072_v24  ;;  %v1064_v39 = vld [vmem:[#allocation6 + $0xe8] sm:$0xf0] }
  0x2d   :  { %403 = vmatpush.bf16.msra.mxu0 %v967_v63  ;;  %v1139_v36 = vor.u32 %v1378_v25, %v1136_v26  ;;  %v960_v38 = vld [vmem:[#allocation6 + $0x18] sm:$0xf0]  ;;  %v1376_v40 = vld [vmem:[#allocation6 + $0x164] sm:$0xf]  ;;  %v1128_v41 = vld [vmem:[#allocation6 + $0x168] sm:$0xf0]  ;;  %v1067_v48 = vor.u32 %v1360_v33, %v1064_v39 }
  0x2e   :  { %416 = vmatpush.bf16.msra.mxu1 %v1031_v4  ;;  %v963_v45 = vor.u32 %v1334_v29, %v960_v38  ;;  %v1358_v46 = vld [vmem:[#allocation6 + $0xd4] sm:$0xf]  ;;  %v1056_v47 = vld [vmem:[#allocation6 + $0xd8] sm:$0xf0]  ;;  %v1131_v49 = vor.u32 %v1376_v40, %v1128_v41  ;;  %v1332_v51 = vld [vmem:[#allocation6 + $0x4] sm:$0xf] }
  0x2f   :  { %429 = vmatpush.bf16.msra.mxu2 %v1095_v5  ;;  %v95_v32 = vld.sshfl [vmem:[#allocation1 + $0x10] sm:$0xff pattern:$0x73625140]  ;;  %v93_v34 = vld.sshfl [vmem:[#allocation1] sm:$0xff pattern:$0x73625140]  ;;  %v1059_v60 = vor.u32 %v1358_v46, %v1056_v47 }
  0x30   :  { %441 = vmatpush.bf16.msra.mxu3 %v979_v15  ;;  %v94_v37 = vld.sshfl [vmem:[#allocation1 + $0x8] sm:$0xff pattern:$0x73625140]  ;;  %v99_v42 = vpack.c.bf16 %v93_v34, %v93_v34  ;;  %v1627_v43 = vpack.c.bf16 %v95_v32, %v95_v32  ;;  %v1374_v50 = vld [vmem:[#allocation6 + $0x154] sm:$0xf]  ;;  %s1638_s27 = sld [smem:[#allocation2]] }
  0x31   :  { %404 = vmatpush.bf16.msra.mxu0 %v959_v11  ;;  %v1629_v44 = vpack.c.bf16 %v94_v37, %v94_v37  ;;  %v952_v52 = vld [vmem:[#allocation6 + $0x8] sm:$0xf0]  ;;  %v1120_v53 = vld [vmem:[#allocation6 + $0x158] sm:$0xf0]  ;;  %v1198_v54 = vld [vmem:[#allocation7 + $0x70] sm:$0xf] }
  0x32   :  { %417 = vmatpush.bf16.msra.mxu1 %v1023_v16  ;;  %v1395_v55 = vld [vmem:[#allocation7 + $0x74] sm:$0xf0]  ;;  %v1190_v57 = vld [vmem:[#allocation7 + $0x60] sm:$0xf]  ;;  %v955_v58 = vor.u32 %v1332_v51, %v952_v52  ;;  %v1393_v59 = vld [vmem:[#allocation7 + $0x64] sm:$0xf0]  ;;  %v1123_v61 = vor.u32 %v1374_v50, %v1120_v53 }
  0x33   :  { %430 = vmatpush.bf16.msra.mxu2 %v1087_v17  ;;  %v1199_v56 = vor.u32 %v1395_v55, %v1198_v54  ;;  %v1356_v62 = vld [vmem:[#allocation6 + $0xc4] sm:$0xf]  ;;  %v1048_v63 = vld [vmem:[#allocation6 + $0xc8] sm:$0xf0]  ;;  %v1191_v2 = vor.u32 %v1393_v59, %v1190_v57  ;;  %v1182_v3 = vld [vmem:[#allocation7 + $0x50] sm:$0xf] }
  0x34   :  { %442 = vmatpush.bf16.msra.mxu3 %v971_v28  ;;  %v1372_v0 = vld [vmem:[#allocation6 + $0x144] sm:$0xf]  ;;  %v1112_v1 = vld [vmem:[#allocation6 + $0x148] sm:$0xf0]  ;;  %v1391_v4 = vld [vmem:[#allocation7 + $0x54] sm:$0xf0]  ;;  %v1051_v5 = vor.u32 %v1356_v62, %v1048_v63 }
  0x35   :  { %405 = vmatpush.bf16.msra.mxu0 %v951_v27  ;;  %v1115_v6 = vor.u32 %v1372_v0, %v1112_v1  ;;  %v1354_v7 = vld [vmem:[#allocation6 + $0xb4] sm:$0xf]  ;;  %v1040_v8 = vld [vmem:[#allocation6 + $0xb8] sm:$0xf0]  ;;  %v1183_v11 = vor.u32 %v1391_v4, %v1182_v3  ;;  %v1174_v12 = vld [vmem:[#allocation7 + $0x40] sm:$0xf] }
  0x36   :  { %418 = vmatpush.bf16.msra.mxu1 %v1015_v30  ;;  %v1370_v9 = vld [vmem:[#allocation6 + $0x134] sm:$0xf]  ;;  %v1104_v10 = vld [vmem:[#allocation6 + $0x138] sm:$0xf0]  ;;  %v1389_v13 = vld [vmem:[#allocation7 + $0x44] sm:$0xf0]  ;;  %v1043_v14 = vor.u32 %v1354_v7, %v1040_v8 }
  0x37   :  { %431 = vmatpush.bf16.msra.mxu2 %v1079_v31  ;;  %v1107_v15 = vor.u32 %v1370_v9, %v1104_v10  ;;  %v1352_v16 = vld [vmem:[#allocation6 + $0xa4] sm:$0xf]  ;;  %v1032_v17 = vld [vmem:[#allocation6 + $0xa8] sm:$0xf0]  ;;  %v1175_v20 = vor.u32 %v1389_v13, %v1174_v12  ;;  %v1166_v21 = vld [vmem:[#allocation7 + $0x30] sm:$0xf] }
  0x38   :  { %406 = vmatmul.bf16.vlgmr.msra.gmra.mxu0 %v99_v42  ;;  %443 = vmatpush.bf16.msra.mxu3 %v963_v45  ;;  %v1368_v18 = vld [vmem:[#allocation6 + $0x124] sm:$0xf]  ;;  %v1096_v19 = vld [vmem:[#allocation6 + $0x128] sm:$0xf0]  ;;  %v1387_v22 = vld [vmem:[#allocation7 + $0x34] sm:$0xf0]  ;;  %v1035_v23 = vor.u32 %v1352_v16, %v1032_v17 }
  0x39   :  { %450 = vmatpush.bf16.msrb.mxu0 %v1075_v35  ;;  %419 = vmatmul.bf16.vlgmr.msra.gmra.mxu1 %v1629_v44  ;;  %v1099_v24 = vor.u32 %v1368_v18, %v1096_v19  ;;  %v1350_v25 = vld [vmem:[#allocation6 + $0x94] sm:$0xf]  ;;  %v1024_v26 = vld [vmem:[#allocation6 + $0x98] sm:$0xf0]  ;;  %v1167_v29 = vor.u32 %v1387_v22, %v1166_v21  ;;  %v1348_v32 = vld [vmem:[#allocation6 + $0x84] sm:$0xf] }
  0x3a   :  { %463 = vmatpush.bf16.msrb.mxu1 %v1139_v36  ;;  %432 = vmatmul.bf16.vlgmr.msra.gmra.mxu2 %v1627_v43  ;;  %v1366_v27 = vld [vmem:[#allocation6 + $0x114] sm:$0xf]  ;;  %v1088_v28 = vld [vmem:[#allocation6 + $0x118] sm:$0xf0]  ;;  %v1027_v30 = vor.u32 %v1350_v25, %v1024_v26  ;;  %v1016_v33 = vld [vmem:[#allocation6 + $0x88] sm:$0xf0] }
  0x3b   :  { %683 = vmatpush.bf16.msrb.mxu2 %v1199_v56  ;;  %v1091_v31 = vor.u32 %v1366_v27, %v1088_v28  ;;  %v1364_v34 = vld [vmem:[#allocation6 + $0x104] sm:$0xf]  ;;  %v1080_v35 = vld [vmem:[#allocation6 + $0x108] sm:$0xf0]  ;;  %v1394_v36 = vld [vmem:[#allocation7 + $0x74] sm:$0xf]  ;;  %v1019_v38 = vor.u32 %v1348_v32, %v1016_v33 }
  0x3c   :  { %444 = vmatpush.bf16.msra.mxu3 %v955_v58  ;;  %v1200_v37 = vld [vmem:[#allocation7 + $0x78] sm:$0xf0]  ;;  %v1083_v39 = vor.u32 %v1364_v34, %v1080_v35  ;;  %v1392_v41 = vld [vmem:[#allocation7 + $0x64] sm:$0xf]  ;;  %v1390_v46 = vld [vmem:[#allocation7 + $0x54] sm:$0xf] }
  0x3d   :  { %451 = vmatpush.bf16.msrb.mxu0 %v1067_v48  ;;  %v1203_v40 = vor.u32 %v1394_v36, %v1200_v37  ;;  %v1184_v47 = vld [vmem:[#allocation7 + $0x58] sm:$0xf0]  ;;  %v1176_v50 = vld [vmem:[#allocation7 + $0x48] sm:$0xf0]  ;;  %v1386_v52 = vld [vmem:[#allocation7 + $0x34] sm:$0xf] }
  0x3e   :  { %464 = vmatpush.bf16.msrb.mxu1 %v1131_v49  ;;  %v1187_v48 = vor.u32 %v1390_v46, %v1184_v47  ;;  %v1388_v49 = vld [vmem:[#allocation7 + $0x44] sm:$0xf]  ;;  %v1168_v53 = vld [vmem:[#allocation7 + $0x38] sm:$0xf0]  ;;  %v1158_v55 = vld [vmem:[#allocation7 + $0x20] sm:$0xf] }
  0x3f   :  { %684 = vmatpush.bf16.msrb.mxu2 %v1191_v2  ;;  %445 = vmatmul.bf16.vlgmr.msra.gmra.mxu3 %v99_v42  ;;  %v1192_v42 = vld [vmem:[#allocation7 + $0x68] sm:$0xf0]  ;;  %v1179_v51 = vor.u32 %v1388_v49, %v1176_v50  ;;  %v1171_v54 = vor.u32 %v1386_v52, %v1168_v53  ;;  %v1385_v56 = vld [vmem:[#allocation7 + $0x24] sm:$0xf0]  ;;  %v1384_v57 = vld [vmem:[#allocation7 + $0x24] sm:$0xf] }
  0x40   :  { %v1195_v45 = vor.u32 %v1392_v41, %v1192_v42  ;;  %v1159_v58 = vor.u32 %v1385_v56, %v1158_v55  ;;  %v1160_v59 = vld [vmem:[#allocation7 + $0x28] sm:$0xf0]  ;;  %v1411_v63 = vld [vmem:[#allocation7 + $0xf4] sm:$0xf0]  ;;  %v1382_v0 = vld [vmem:[#allocation7 + $0x14] sm:$0xf] }
  0x41   :  { %452 = vmatpush.bf16.msrb.mxu0 %v1059_v60  ;;  %v1163_v60 = vor.u32 %v1384_v57, %v1160_v59  ;;  %v1152_v1 = vld [vmem:[#allocation7 + $0x18] sm:$0xf0]  ;;  %v1410_v4 = vld [vmem:[#allocation7 + $0xf4] sm:$0xf]  ;;  %v1142_v7 = vld [vmem:[#allocation7] sm:$0xf] }
  0x42   :  { %465 = vmatpush.bf16.msrb.mxu1 %v1123_v61  ;;  %v1262_v61 = vld [vmem:[#allocation7 + $0xf0] sm:$0xf]  ;;  %v1155_v3 = vor.u32 %v1382_v0, %v1152_v1  ;;  %v1381_v8 = vld [vmem:[#allocation7 + $0x4] sm:$0xf0]  ;;  %v1254_v9 = vld [vmem:[#allocation7 + $0xe0] sm:$0xf] }
  0x43   :  { %685 = vmatpush.bf16.msrb.mxu2 %v1183_v11  ;;  %v1263_v2 = vor.u32 %v1411_v63, %v1262_v61  ;;  %v1143_v10 = vor.u32 %v1381_v8, %v1142_v7  ;;  %v1409_v11 = vld [vmem:[#allocation7 + $0xe4] sm:$0xf0]  ;;  %v1380_v12 = vld [vmem:[#allocation7 + $0x4] sm:$0xf]  ;;  %v1144_v13 = vld [vmem:[#allocation7 + $0x8] sm:$0xf0] }
  0x44   :  { %v1408_v16 = vld [vmem:[#allocation7 + $0xe4] sm:$0xf]  ;;  %v1256_v17 = vld [vmem:[#allocation7 + $0xe8] sm:$0xf0]  ;;  %v1246_v19 = vld [vmem:[#allocation7 + $0xd0] sm:$0xf] }
  0x45   :  { %453 = vmatpush.bf16.msrb.mxu0 %v1051_v5  ;;  %v1264_v5 = vld [vmem:[#allocation7 + $0xf8] sm:$0xf0]  ;;  %696 = vmatpush.bf16.msrb.mxu3 %v1263_v2  ;;  %v1259_v18 = vor.u32 %v1408_v16, %v1256_v17  ;;  %v1406_v21 = vld [vmem:[#allocation7 + $0xd4] sm:$0xf]  ;;  %v1238_v25 = vld [vmem:[#allocation7 + $0xc0] sm:$0xf] }
  0x46   :  { %466 = vmatpush.bf16.msrb.mxu1 %v1115_v6  ;;  %v1267_v6 = vor.u32 %v1410_v4, %v1264_v5  ;;  %v1405_v26 = vld [vmem:[#allocation7 + $0xc4] sm:$0xf0]  ;;  %v1404_v27 = vld [vmem:[#allocation7 + $0xc4] sm:$0xf]  ;;  %v1240_v28 = vld [vmem:[#allocation7 + $0xc8] sm:$0xf0] }
  0x47   :  { %686 = vmatpush.bf16.msrb.mxu2 %v1175_v20  ;;  %v1407_v20 = vld [vmem:[#allocation7 + $0xd4] sm:$0xf0]  ;;  %v1402_v33 = vld [vmem:[#allocation7 + $0xb4] sm:$0xf]  ;;  %v1232_v34 = vld [vmem:[#allocation7 + $0xb8] sm:$0xf0] }
  0x48   :  { %v1247_v22 = vor.u32 %v1407_v20, %v1246_v19  ;;  %v1403_v32 = vld [vmem:[#allocation7 + $0xb4] sm:$0xf0]  ;;  %v1235_v36 = vor.u32 %v1402_v33, %v1232_v34  ;;  %v1222_v37 = vld [vmem:[#allocation7 + $0xa0] sm:$0xf]  ;;  %v1214_v47 = vld [vmem:[#allocation7 + $0x90] sm:$0xf] }
  0x49   :  { %454 = vmatpush.bf16.msrb.mxu0 %v1043_v14  ;;  %v1255_v14 = vor.u32 %v1409_v11, %v1254_v9  ;;  %v152_v41 = vld [vmem:[%s1653_s3] sm:$0x3]  ;;  %v1398_v49 = vld [vmem:[#allocation7 + $0x94] sm:$0xf]  ;;  %v1206_v56 = vld [vmem:[#allocation7 + $0x80] sm:$0xf] }
  0x4a   :  { %467 = vmatpush.bf16.msrb.mxu1 %v1107_v15  ;;  %v1147_v15 = vor.u32 %v1380_v12, %v1144_v13  ;;  %v154_v46 = vperm.slane %v152_v41, 0  ;;  %v1397_v57 = vld [vmem:[#allocation7 + $0x84] sm:$0xf0]  ;;  %v155_v7 = vperm.slane %v152_v41, 1  ;;  %v1427_v19 = vld [vmem:[#allocation9 + $0x78] sm:$0xff]  ;;  %v1426_v20 = vld [vmem:[#allocation9 + $0x70] sm:$0xff] }
  0x4b   :  { %687 = vmatpush.bf16.msrb.mxu2 %v1167_v29  ;;  %697 = vmatpush.bf16.msrb.mxu3 %v1255_v14  ;;  %v1239_v29 = vor.u32 %v1405_v26, %v1238_v25  ;;  %v1207_v59 = vor.u32 %v1397_v57, %v1206_v56  ;;  %v1417_v25 = vld [vmem:[#allocation9 + $0x28] sm:$0xff]  ;;  %v1423_v26 = vld [vmem:[#allocation9 + $0x58] sm:$0xff]  ;;  %s947_s29 = sld [smem:[#allocation2 + $0x1]]  ;;  %vm902_vm4 = vcmask 1041408   ;;  %s935_s12 = sshll.u32 %s1658_s8, 4  ;;  %s936_s12 = int_to_ptr.hbm [resolvable:$true] %s935_s12 }
  0x4c   :  { %v1413_v33 = vld [vmem:[#allocation9 + $0x8] sm:$0xff] }
  0x4d   :  { %455 = vmatpush.bf16.msrb.mxu0 %v1035_v23  ;;  %v1248_v23 = vld [vmem:[#allocation7 + $0xd8] sm:$0xf0] }
  0x4e   :  { %468 = vmatpush.bf16.msrb.mxu1 %v1099_v24  ;;  %v1251_v24 = vor.u32 %v1406_v21, %v1248_v23  ;;  %v1419_v21 = vld [vmem:[#allocation9 + $0x38] sm:$0xff]  ;;  %v1418_v23 = vld [vmem:[#allocation9 + $0x30] sm:$0xff] }
  0x4f   :  { %688 = vmatpush.bf16.msrb.mxu2 %v1159_v58  ;;  %698 = vmatpush.bf16.msrb.mxu3 %v1247_v22  ;;  %v1396_v58 = vld [vmem:[#allocation7 + $0x84] sm:$0xf]  ;;  %v1425_v22 = vld [vmem:[#allocation9 + $0x68] sm:$0xff] }
  0x51   :  { %456 = vmatpush.bf16.msrb.mxu0 %v1027_v30  ;;  %v1243_v30 = vor.u32 %v1404_v27, %v1240_v28  ;;  %v1416_v27 = vld [vmem:[#allocation9 + $0x20] sm:$0xff]  ;;  %v1422_v28 = vld [vmem:[#allocation9 + $0x50] sm:$0xff] }
  0x52   :  { %469 = vmatpush.bf16.msrb.mxu1 %v1091_v31  ;;  %v1230_v31 = vld [vmem:[#allocation7 + $0xb0] sm:$0xf] }
  0x53   :  { %699 = vmatpush.bf16.msrb.mxu3 %v1239_v29  ;;  %v1231_v35 = vor.u32 %v1403_v32, %v1230_v31  ;;  %v1415_v29 = vld [vmem:[#allocation9 + $0x18] sm:$0xff]  ;;  %v1414_v31 = vld [vmem:[#allocation9 + $0x10] sm:$0xff]  ;;  %v1420_v32 = vld [vmem:[#allocation9 + $0x40] sm:$0xff] }
  0x55   :  { %457 = vmatpush.bf16.msrb.mxu0 %v1019_v38  ;;  %v1401_v38 = vld [vmem:[#allocation7 + $0xa4] sm:$0xf0] }
  0x56   :  { %470 = vmatpush.bf16.msrb.mxu1 %v1083_v39  ;;  %v1400_v39 = vld [vmem:[#allocation7 + $0xa4] sm:$0xf]  ;;  %v1223_v42 = vor.u32 %v1401_v38, %v1222_v37 }
  0x57   :  { %700 = vmatpush.bf16.msrb.mxu3 %v1231_v35  ;;  %v1412_v35 = vld [vmem:[#allocation9] sm:$0xff] }
  0x58   :  { %458 = vmatmul.bf16.vlgmr.msrb.gmra.mxu0 %v1629_v44  ;;  %v1383_v44 = vld [vmem:[#allocation7 + $0x14] sm:$0xf0] }
  0x59   :  { %709 = vmatpush.bf16.msra.mxu0 %v1203_v40  ;;  %471 = vmatmul.bf16.vlgmr.msrb.gmra.mxu1 %v1627_v43  ;;  %v1150_v43 = vld [vmem:[#allocation7 + $0x10] sm:$0xf]  ;;  %v1224_v40 = vld [vmem:[#allocation7 + $0xa8] sm:$0xf0] }
  0x5a   :  { %v1151_v62 = vor.u32 %v1383_v44, %v1150_v43  ;;  %722 = vmatpush.bf16.msra.mxu1 %v1267_v6 }
  0x5b   :  { %701 = vmatpush.bf16.msrb.mxu3 %v1223_v42 }
  0x5c   :  { %689 = vmatpush.bf16.msrb.mxu2 %v1151_v62  ;;  %v478_v62 = vstv %s1638_s27 }
  0x5d   :  { %710 = vmatpush.bf16.msra.mxu0 %v1195_v45  ;;  %v1227_v45 = vor.u32 %v1400_v39, %v1224_v40  ;;  %v517_v39 = vld [vmem:[%s1655_s5] sm:$0x3] }
  0x5e   :  { %723 = vmatpush.bf16.msra.mxu1 %v1259_v18  ;;  %v520_v40 = vperm.slane %v517_v39, 1 }
  0x60   :  { %690 = vmatpush.bf16.msrb.mxu2 %v1143_v10 }
  0x61   :  { %711 = vmatpush.bf16.msra.mxu0 %v1187_v48  ;;  %v1399_v48 = vld [vmem:[#allocation7 + $0x94] sm:$0xf0] }
  0x62   :  { %724 = vmatpush.bf16.msra.mxu1 %v1251_v24  ;;  %v1215_v50 = vor.u32 %v1399_v48, %v1214_v47  ;;  %v1424_v24 = vld [vmem:[#allocation9 + $0x60] sm:$0xff] }
  0x64   :  { %702 = vmatpush.bf16.msrb.mxu3 %v1215_v50  ;;  %876 = vmatpush.bf16.msra.mxu2 %v1419_v21 }
  0x65   :  { %712 = vmatpush.bf16.msra.mxu0 %v1179_v51  ;;  %v1216_v51 = vld [vmem:[#allocation7 + $0x98] sm:$0xf0] }
  0x66   :  { %725 = vmatpush.bf16.msra.mxu1 %v1243_v30  ;;  %v1219_v53 = vor.u32 %v1398_v49, %v1216_v51  ;;  %v1421_v30 = vld [vmem:[#allocation9 + $0x48] sm:$0xff] }
  0x68   :  { %703 = vmatpush.bf16.msrb.mxu3 %v1207_v59  ;;  %877 = vmatpush.bf16.msra.mxu2 %v1418_v23 }
  0x69   :  { %713 = vmatpush.bf16.msra.mxu0 %v1171_v54 }
  0x6a   :  { %726 = vmatpush.bf16.msra.mxu1 %v1235_v36 }
  0x6c   :  { %889 = vmatpush.bf16.msra.mxu3 %v1427_v19  ;;  %878 = vmatpush.bf16.msra.mxu2 %v1417_v25 }
  0x6d   :  { %714 = vmatpush.bf16.msra.mxu0 %v1163_v60  ;;  %v1208_v60 = vld [vmem:[#allocation7 + $0x88] sm:$0xf0] }
  0x6e   :  { %727 = vmatpush.bf16.msra.mxu1 %v1227_v45  ;;  %v1211_v44 = vor.u32 %v1396_v58, %v1208_v60  ;;  %v737_v45 = vstv %s947_s29  ;;  %v1437_v60 = vld [vmem:[%s1657_s7] ss:$0 sm:$0xff]  ;;  %s1566_s7 = smov [#allocation10]  }
  0x6f   :  { %s933_s9 = sshll.u32 %s1566_s7, 4  ;;  %s934_s9 = int_to_ptr.vmem [resolvable:$true] %s933_s9 }
  0x70   :  { %890 = vmatpush.bf16.msra.mxu3 %v1426_v20  ;;  %879 = vmatpush.bf16.msra.mxu2 %v1416_v27 }
  0x71   :  { %715 = vmatpush.bf16.msra.mxu0 %v1155_v3 }
  0x72   :  { %728 = vmatpush.bf16.msra.mxu1 %v1219_v53 }
  0x74   :  { %891 = vmatpush.bf16.msra.mxu3 %v1425_v22  ;;  %880 = vmatpush.bf16.msra.mxu2 %v1415_v29 }
  0x75   :  { %716 = vmatpush.bf16.msra.mxu0 %v1147_v15 }
  0x76   :  { %729 = vmatpush.bf16.msra.mxu1 %v1211_v44 }
  0x78   :  { %892 = vmatpush.bf16.msra.mxu3 %v1424_v24  ;;  %881 = vmatpush.bf16.msra.mxu2 %v1414_v31 }
  0x7c   :  { %893 = vmatpush.bf16.msra.mxu3 %v1423_v26  ;;  %882 = vmatpush.bf16.msra.mxu2 %v1413_v33 }
  0x80   :  { %894 = vmatpush.bf16.msra.mxu3 %v1422_v28  ;;  %883 = vmatpush.bf16.msra.mxu2 %v1412_v35 }
  0x84   :  { %895 = vmatpush.bf16.msra.mxu3 %v1421_v30 }
  0x88   :  { %896 = vmatpush.bf16.msra.mxu3 %v1420_v32 }
  0xb5   :  { %v407_v52 = vpop.f32.mrf.mxu0 }
  0xb6   :  { %v408_v54 = vadd.f32 %v407_v52, %v154_v46  ;;  %v420_v55 = vpop.f32.mrf.mxu1  ;;  %v519_v46 = vperm.slane %v517_v39, 0 }
  0xb8   :  { %v421_v43 = vadd.f32 %v420_v55, %v408_v54 }
  0xbd   :  { %v433_v61 = vpop.f32.mrf.mxu2  ;;  %v409_v0 = vpop.f32.mrf.mxu0 }
  0xbe   :  { %v434_v63 = vadd.f32 %v433_v61, %v421_v43  ;;  %v422_v1 = vpop.f32.mrf.mxu1 }
  0xc0   :  { %vm476_vm0 = vcmp.gt.f32.partialorder %v434_v63, 0.0  ;;  %v479_v2 = vmul.f32 %v478_v62, %v434_v63 }
  0xc2   :  { %v481_v3 = vsel %vm476_vm0, %v434_v63, %v479_v2  ;;  %v446_v5 = vpop.f32.mrf.mxu3 }
  0xc3   :  { %v483_v4 = vpack.c.bf16 %v481_v3, %v481_v3  ;;  %v447_v9 = vadd.f32 %v446_v5, %v155_v7 }
  0xc5   :  { %691 = vmatmul.bf16.vlgmr.msrb.gmra.mxu2 %v483_v4  ;;  %717 = vmatmul.bf16.vlgmr.msra.gmra.mxu0 %v483_v4  ;;  %v435_v6 = vpop.f32.mrf.mxu2 }
  0xca   :  { %v448_v8 = vpop.f32.mrf.mxu3 }
  0xd5   :  { %v459_v10 = vpop.f32.mrf.mxu0 }
  0xd6   :  { %v472_v11 = vpop.f32.mrf.mxu1  ;;  %v460_v12 = vadd.f32 %v459_v10, %v447_v9 }
  0xd8   :  { %v473_v13 = vadd.f32 %v472_v11, %v460_v12 }
  0xda   :  { %vm477_vm1 = vcmp.gt.f32.partialorder %v473_v13, 0.0  ;;  %v480_v14 = vmul.f32 %v478_v62, %v473_v13 }
  0xdc   :  { %v482_v15 = vsel %vm477_vm1, %v473_v13, %v480_v14 }
  0xdd   :  { %v461_v16 = vpop.f32.mrf.mxu0  ;;  %v484_v18 = vpack.c.bf16 %v482_v15, %v482_v15 }
  0xde   :  { %v474_v17 = vpop.f32.mrf.mxu1 }
  0xdf   :  { %704 = vmatmul.bf16.vlgmr.msrb.gmra.mxu3 %v484_v18  ;;  %730 = vmatmul.bf16.vlgmr.msra.gmra.mxu1 %v484_v18 }
 0x142   :  { %v718_v34 = vpop.f32.mrf.mxu0 }
 0x143   :  { %v719_v41 = vadd.f32 %v718_v34, %v520_v40 }
 0x148   :  { %v692_v36 = vpop.f32.mrf.mxu2 }
 0x149   :  { %v693_v49 = vadd.f32 %v692_v36, %v519_v46 }
 0x14a   :  { %v720_v37 = vpop.f32.mrf.mxu0 }
 0x150   :  { %v694_v38 = vpop.f32.mrf.mxu2 }
 0x15c   :  { %v731_v42 = vpop.f32.mrf.mxu1 }
 0x15d   :  { %v732_v47 = vadd.f32 %v731_v42, %v719_v41 }
 0x15f   :  { %vm736_vm2 = vcmp.gt.f32.partialorder %v732_v47, 0.0  ;;  %v739_v48 = vmul.f32 %v737_v45, %v732_v47 }
 0x161   :  { %v741_v50 = vsel %vm736_vm2, %v732_v47, %v739_v48 }
 0x162   :  { %v743_v51 = vpack.c.bf16 %v741_v50, %v741_v50  ;;  %v705_v52 = vpop.f32.mrf.mxu3 }
 0x163   :  { %v706_v53 = vadd.f32 %v705_v52, %v693_v49 }
 0x164   :  { %v733_v54 = vpop.f32.mrf.mxu1  ;;  %897 = vmatmul.bf16.vlgmr.msra.gmra.mxu3 %v743_v51 }
 0x165   :  { %vm735_vm3 = vcmp.gt.f32.partialorder %v706_v53, 0.0  ;;  %v738_v55 = vmul.f32 %v737_v45, %v706_v53 }
 0x167   :  { %v740_v56 = vsel %vm735_vm3, %v706_v53, %v738_v55 }
 0x168   :  { %v742_v57 = vpack.c.bf16 %v740_v56, %v740_v56 }
 0x16a   :  { %v707_v58 = vpop.f32.mrf.mxu3  ;;  %884 = vmatmul.bf16.vlgmr.msra.gmra.mxu2 %v742_v57 }
 0x1e7   :  { %v898_v59 = vpop.f32.mrf.mxu3 }
 0x1ed   :  { %v885_v43 = vpop.f32.mrf.mxu2 }
 0x1ee   :  { %v886_v44 = vadd.f32 %v1437_v60, %v885_v43 }
 0x1ef   :  { %v900_v61 = vpop.f32.mrf.mxu3 }
 0x1f0   :  { %v899_v62 = vadd.f32 %v898_v59, %v886_v44 }
 0x1f2   :  { %v903_v63 = vsel %vm902_vm4, %v899_v62, -inf }
 0x1f3   :  { %904 = vmax.xlane.f32.xlu0 %v903_v63 }
 0x1f5   :  { %v887_v0 = vpop.f32.mrf.mxu2 }
 0x266   :  { %v905_v1 = vpop.xlane.xlu0 %904 }
 0x267   :  { %v906_v2 = vsub.f32 %v899_v62, %v905_v1 }
 0x269   :  { %v907_v3 = vmul.f32 1.442695, %v906_v2 }
 0x26b   :  { %1438 = vpow2.f32 %v907_v3 }
 0x271   :  { %v1439_v4 = vpop.eup %1438 }
 0x272   :  { %v909_v5 = vsel %vm902_vm4, %v1439_v4, 0.0 }
 0x273   :  { %910 = vadd.xlane.f32.xlu0 %v909_v5 }
 0x2e6   :  { %v911_v6 = vpop.xlane.xlu0 %910 }
 0x2e7   :  { %1440 = vrcp.f32 %v911_v6  ;;  %v923_v10 = vand.u32 2147483648, %v911_v6  ;;  %v921_v12 = vand.u32 2147483647, %v911_v6  ;;  %vm917_vm6 = vweird.f32 %v911_v6 }
 0x2e9   :  { %v924_v14 = vor.u32 1.1754944e-38, %v923_v10  ;;  %vm922_vm8 = vcmp.eq.f32.partialorder %v921_v12, 8.507059e+37 }
 0x2ed   :  { %v1441_v7 = vpop.eup %1440 }
 0x2ee   :  { %v913_v8 = vmul.f32 %v1441_v7, %v911_v6  ;;  %vm918_vm5 = vweird.f32 %v1441_v7 }
 0x2ef   :  { %vm919_vm7 = vmor %vm917_vm6, %vm918_vm5 }
 0x2f0   :  { %v914_v9 = vsub.f32 1.0, %v913_v8 }
 0x2f2   :  { %v915_v11 = vmul.f32 %v1441_v7, %v914_v9 }
 0x2f4   :  { %v916_v13 = vadd.f32 %v1441_v7, %v915_v11 }
 0x2f6   :  { %v920_v15 = vsel %vm919_vm7, %v1441_v7, %v916_v13 }
 0x2f7   :  { %v925_v16 = vsel %vm922_vm8, %v924_v14, %v920_v15 }
 0x2f8   :  { %v926_v17 = vmul.f32 %v1439_v4, %v925_v16 }
 0x2fa   :  { %927 = vst [vmem:[#allocation10] sm:$0x3] %v926_v17 }
 0x2fb   :  { %938 = dma.vmem_to_hbm [thread:$0]  %s934_s9, 32, %s936_s12, [#allocation4]  }
 0x2fc   :  { %1556 = dma.done.wait [#allocation4], 32  }
 0x2fd   :  { %1557 = vsyncadd [#allocation4], 4294967264 }
 0x2fe   :  { %943 = vsyncpa [#allocation3], 1 }
 0x2ff   :  { %944 = vsyncpa [#allocation8], 1 }
 0x300   :  { %945 = vsyncpa [#allocation4], 1 }
 0x301   :  { %946 = vsyncpa [#allocation5], 1 }

</bundles_post_ra>
